<compile_context>
chip_gen: v5e
topology: v5e:2x2
jax: 0.10.0
libtpu: 0.0.40
codegen_flags: <defaults>
</compile_context>

<pallas_src>
import jax
import jax.numpy as jnp
from jax.experimental import pallas as pl
from jax.experimental.pallas import tpu as pltpu


def _round_up(x, m):
    return ((x + m - 1) // m) * m


def _ceil_div(a, b):
    return -(-a // b)


def _generate_node_kernel(x_ref, w_ref, b_ref, ps_ref, po_ref, out_ref):
    """x:(tm,Kp) bf16, w:(Kp,4H) bf16, b/ps/po:(1,4H) f32, out:(tm,4H) f32.

    Lane layout of the 4H(=128 for H=32) output lanes: [zl | zlg | zr | zrg].
    Gate columns of w/b were pre-scaled by 0.5 in the wrapper, so a single tanh
    gives tanh(zl), tanh(0.5*zlg), tanh(zr), tanh(0.5*zrg); the per-lane affine
    (ps, po) = ([1,.5,1,.5], [0,.5,0,.5]) per H-lane group then yields
    [tanh(zl) | sigmoid(zlg) | tanh(zr) | sigmoid(zrg)].
    """
    h = out_ref.shape[1] // 4

    # Single fused MXU pass, f32 accumulation, fused bias.
    z = jnp.dot(x_ref[...], w_ref[...], preferred_element_type=jnp.float32)
    z = z + b_ref[...]

    # One full-vreg EUP tanh (gate 0.5 pre-scale already folded into W/b).
    t = jnp.tanh(z)
    # Per-lane FMA: value lanes stay tanh, gate lanes become sigmoid = 0.5*tanh(0.5*z)+0.5.
    a = t * ps_ref[...] + po_ref[...]

    # Rotate lanes so each gate group lands on its value group (XLU slot, ~free):
    # roll(a, 3h)[j] = a[(j + h) mod 4h]  ->  lanes [0:h) see sigmoid(zlg),
    # lanes [2h:3h) see sigmoid(zrg).
    g = pltpu.roll(a, shift=3 * h, axis=1)

    # Lane-dense (tm, 4H) store; lanes [0:h)=l_child, [2h:3h)=r_child,
    # remaining lanes are don't-care and sliced away in the wrapper.
    out_ref[...] = (a * g).astype(out_ref.dtype)


def generate_node_pallas(ne, cc, lab, w_kernel, b_kernel, post_scale, post_offset,
                         *, tm_max=2048):
    """ne, cc: (B, H) f32; lab: (B, E) f32; w_kernel: (Kp, 4H) bf16 (gate cols pre-scaled,
    K zero-padded to 128-multiple); b_kernel/post_scale/post_offset: (1, 4H) f32."""
    B, H = ne.shape
    E = lab.shape[1]
    in_dim = 2 * H + E
    Kp, out_dim = w_kernel.shape  # Kp = round_up(in_dim, 128), out_dim = 4H

    # Batch tiling derived from B (avoids near-2x padding for B just above a tile
    # multiple); multiple of 16 for bf16 sublane packing; >=2 grid steps when
    # B >= 32 so the "parallel" axis can shard across v7x's 2 TensorCores.
    n_tiles = max(1, _ceil_div(B, tm_max))
    if n_tiles == 1 and B >= 32:
        n_tiles = 2
    tm = _round_up(_ceil_div(B, n_tiles), 16)
    Bp = tm * n_tiles

    # Single fused input prep: one concat -> one bf16 cast -> one pad
    # (batch pad and K pad to the MXU-native 128 reduction done together).
    x = jnp.concatenate([ne, cc, lab], axis=1).astype(jnp.bfloat16)
    x = jnp.pad(x, ((0, Bp - B), (0, Kp - in_dim)))

    cost = pl.CostEstimate(
        flops=2 * Bp * Kp * out_dim + 5 * Bp * out_dim,
        transcendentals=Bp * out_dim,
        bytes_accessed=(Bp * Kp * 2            # bf16 fused input
                        + Kp * out_dim * 2     # bf16 fused weight
                        + 3 * out_dim * 4      # f32 bias + per-lane constants
                        + Bp * out_dim * 4),   # f32 fused output
    )

    out = pl.pallas_call(
        _generate_node_kernel,
        out_shape=jax.ShapeDtypeStruct((Bp, out_dim), jnp.float32),
        grid=(n_tiles,),
        in_specs=[
            pl.BlockSpec((tm, Kp), lambda i: (i, 0)),
            # Constant index_maps below: pipeline skips re-DMA across grid steps.
            pl.BlockSpec((Kp, out_dim), lambda i: (0, 0)),
            pl.BlockSpec((1, out_dim), lambda i: (0, 0)),
            pl.BlockSpec((1, out_dim), lambda i: (0, 0)),
            pl.BlockSpec((1, out_dim), lambda i: (0, 0)),
        ],
        out_specs=pl.BlockSpec((tm, out_dim), lambda i: (i, 0)),
        compiler_params=pltpu.CompilerParams(
            dimension_semantics=("parallel",),
        ),
        cost_estimate=cost,
    )(x, w_kernel, b_kernel, post_scale, post_offset)

    # Static lane slices of the lane-dense fused output (XLA-side, trivial).
    l_child = out[:B, 0:H]
    r_child = out[:B, 2 * H:3 * H]
    return l_child, r_child


def init_params(key, hidden_size, op_nums, embedding_size):
    """Parameter init mirroring the PyTorch module; the four Linear layers are fused
    as [Wl | Wlg | Wr | Wrg] with gate columns pre-scaled by 0.5 and the reduction
    dim zero-padded to a 128 multiple for the kernel."""
    H = hidden_size
    in_dim = 2 * H + embedding_size
    keys = jax.random.split(key, 9)
    bound = 1.0 / jnp.sqrt(jnp.float32(in_dim))

    def lin_w(k):
        # stored as (in_dim, H) so the kernel computes x @ W
        return jax.random.uniform(k, (in_dim, H), jnp.float32, -bound, bound)

    def lin_b(k):
        return jax.random.uniform(k, (1, H), jnp.float32, -bound, bound)

    wl, wlg, wr, wrg = lin_w(keys[1]), lin_w(keys[3]), lin_w(keys[5]), lin_w(keys[7])
    bl, blg, br, brg = lin_b(keys[2]), lin_b(keys[4]), lin_b(keys[6]), lin_b(keys[8])

    w_fused = jnp.concatenate([wl, wlg, wr, wrg], axis=1)   # (in_dim, 4H) f32
    b_fused = jnp.concatenate([bl, blg, br, brg], axis=1)   # (1, 4H) f32

    # Per-lane-group masks: values get scale 1, gates get 0.5 (exact power-of-2 fold).
    gate_scale = jnp.concatenate(
        [jnp.ones((1, H), jnp.float32), jnp.full((1, H), 0.5, jnp.float32)] * 2, axis=1)
    gate_offset = jnp.concatenate(
        [jnp.zeros((1, H), jnp.float32), jnp.full((1, H), 0.5, jnp.float32)] * 2, axis=1)

    kp = _round_up(in_dim, 128)
    w_kernel = jnp.pad(w_fused * gate_scale,
                       ((0, kp - in_dim), (0, 0))).astype(jnp.bfloat16)  # (Kp, 4H) bf16
    b_kernel = (b_fused * gate_scale).astype(jnp.float32)                # (1, 4H) f32

    return {
        "embeddings": jax.random.normal(keys[0], (op_nums, embedding_size), jnp.float32),
        "w_kernel": w_kernel,
        "b_kernel": b_kernel,
        "post_scale": gate_scale,        # [1,.5,1,.5] per H-lane group
        "post_offset": gate_offset,      # [0,.5,0,.5] per H-lane group
        # unscaled f32 copies kept only for the reference check
        "w_fused_f32": w_fused,
        "b_fused_f32": b_fused,
    }


def generate_node_forward(params, node_embedding, node_label, current_context):
    """Full GenerateNode.forward (eval mode).

    node_embedding : (B, 1, H) f32
    node_label     : (B,) int32
    current_context: (B, 1, H) f32
    returns (l_child (B,H) f32, r_child (B,H) f32, node_label_ (B,E) f32)
    """
    node_label_ = params["embeddings"][node_label]   # (B, E) gather = plain-JAX glue
    ne = jnp.squeeze(node_embedding, axis=1)          # (B, H)
    cc = jnp.squeeze(current_context, axis=1)         # (B, H)
    # TODO(synk): em_dropout treated as eval-mode identity (p=0.5 only in training).

    l_child, r_child = generate_node_pallas(
        ne, cc, node_label_,
        params["w_kernel"], params["b_kernel"],
        params["post_scale"], params["post_offset"],
    )
    return l_child, r_child, node_label_


if __name__ == "__main__":
    hidden_size = 32
    embedding_size = 32
    op_nums = 8
    B = 2

    key = jax.random.PRNGKey(0)
    k_param, k_ne, k_cc, k_lab = jax.random.split(key, 4)

    params = init_params(k_param, hidden_size, op_nums, embedding_size)

    node_embedding = jax.random.normal(k_ne, (B, 1, hidden_size), jnp.float32)
    current_context = jax.random.normal(k_cc, (B, 1, hidden_size), jnp.float32)
    node_label = jax.random.randint(k_lab, (B,), 0, op_nums, jnp.int32)

    l_child, r_child, node_label_ = generate_node_forward(
        params, node_embedding, node_label, current_context
    )
    jax.block_until_ready((l_child, r_child, node_label_))

    # Pure-JAX reference (same bf16 rounding of activations/weights as the kernel,
    # f32 math; only MXU-vs-XLA accumulation order differs).
    H = hidden_size
    ne_q = node_embedding[:, 0, :].astype(jnp.bfloat16).astype(jnp.float32)
    cc_q = current_context[:, 0, :].astype(jnp.bfloat16).astype(jnp.float32)
    lab_q = params["embeddings"][node_label].astype(jnp.bfloat16).astype(jnp.float32)
    x_ref = jnp.concatenate([ne_q, cc_q, lab_q], axis=1)
    w_ref = params["w_fused_f32"].astype(jnp.bfloat16).astype(jnp.float32)
    z_ref = x_ref @ w_ref + params["b_fused_f32"]
    l_ref = jnp.tanh(z_ref[:, 0:H]) * jax.nn.sigmoid(z_ref[:, H:2 * H])
    r_ref = jnp.tanh(z_ref[:, 2 * H:3 * H]) * jax.nn.sigmoid(z_ref[:, 3 * H:4 * H])

    assert l_child.shape == (B, H) and r_child.shape == (B, H)
    assert node_label_.shape == (B, embedding_size)
    assert jnp.allclose(l_child, l_ref, atol=2e-2, rtol=1e-2), "l_child mismatch"
    assert jnp.allclose(r_child, r_ref, atol=2e-2, rtol=1e-2), "r_child mismatch"

    print("KERNEL_OK")
</pallas_src>

<mosaic_0001>
module attributes {stable_mosaic.version = 11 : i64} {
  func.func @_generate_node_kernel(%arg0: i32, %arg1: memref<16x128xbf16, #tpu.memory_space<vmem>>, %arg2: memref<128x128xbf16, #tpu.memory_space<vmem>>, %arg3: memref<1x128xf32, #tpu.memory_space<vmem>>, %arg4: memref<1x128xf32, #tpu.memory_space<vmem>>, %arg5: memref<1x128xf32, #tpu.memory_space<vmem>>, %arg6: memref<16x128xf32, #tpu.memory_space<vmem>>) attributes {dimension_semantics = [#tpu.dimension_semantics<parallel>], iteration_bounds = array<i64: 1>, scalar_prefetch = 0 : i64, scratch_operands = 0 : i64, tpu.core_type = #tpu.core_type<tc>, window_params = [{transform_indices = @transform_0, window_bounds = array<i64: 16, 128>}, {pipeline_mode = #tpu.pipeline_mode<synchronous>, transform_indices = @transform_1, window_bounds = array<i64: 128, 128>}, {pipeline_mode = #tpu.pipeline_mode<synchronous>, transform_indices = @transform_2, window_bounds = array<i64: 1, 128>}, {pipeline_mode = #tpu.pipeline_mode<synchronous>, transform_indices = @transform_3, window_bounds = array<i64: 1, 128>}, {pipeline_mode = #tpu.pipeline_mode<synchronous>, transform_indices = @transform_4, window_bounds = array<i64: 1, 128>}, {transform_indices = @transform_5, window_bounds = array<i64: 16, 128>}]} {
    %c0 = arith.constant 0 : index
    %c0_0 = arith.constant 0 : index
    %0 = vector.load %arg1[%c0, %c0_0] : memref<16x128xbf16, #tpu.memory_space<vmem>>, vector<16x128xbf16>
    %c0_1 = arith.constant 0 : index
    %c0_2 = arith.constant 0 : index
    %1 = vector.load %arg2[%c0_1, %c0_2] : memref<128x128xbf16, #tpu.memory_space<vmem>>, vector<128x128xbf16>
    %cst = arith.constant dense<0.000000e+00> : vector<16x128xf32>
    %2 = tpu.matmul %0, %1, %cst {dimension_numbers = #tpu.dot_dimension_numbers<[1], [0], [0], [1], [0, 0, 1, 1], [], []>} : vector<16x128xbf16>, vector<128x128xbf16>, vector<16x128xf32> -> vector<16x128xf32>
    %c0_3 = arith.constant 0 : index
    %c0_4 = arith.constant 0 : index
    %3 = vector.load %arg3[%c0_3, %c0_4] : memref<1x128xf32, #tpu.memory_space<vmem>>, vector<1x128xf32>
    %4 = vector.broadcast %3 : vector<1x128xf32> to vector<16x128xf32>
    %5 = arith.addf %2, %4 : vector<16x128xf32>
    %6 = math.tanh %5 : vector<16x128xf32>
    %c0_5 = arith.constant 0 : index
    %c0_6 = arith.constant 0 : index
    %7 = vector.load %arg4[%c0_5, %c0_6] : memref<1x128xf32, #tpu.memory_space<vmem>>, vector<1x128xf32>
    %8 = vector.broadcast %7 : vector<1x128xf32> to vector<16x128xf32>
    %9 = arith.mulf %6, %8 : vector<16x128xf32>
    %c0_7 = arith.constant 0 : index
    %c0_8 = arith.constant 0 : index
    %10 = vector.load %arg5[%c0_7, %c0_8] : memref<1x128xf32, #tpu.memory_space<vmem>>, vector<1x128xf32>
    %11 = vector.broadcast %10 : vector<1x128xf32> to vector<16x128xf32>
    %12 = arith.addf %9, %11 : vector<16x128xf32>
    %c96_i32 = arith.constant 96 : i32
    %13 = tpu.dynamic_rotate %12 by %c96_i32 dim 1 : vector<16x128xf32>, i32 -> vector<16x128xf32>
    %14 = arith.mulf %12, %13 : vector<16x128xf32>
    %c0_9 = arith.constant 0 : index
    %c0_10 = arith.constant 0 : index
    %15 = vector.load %arg6[%c0_9, %c0_10] : memref<16x128xf32, #tpu.memory_space<vmem>>, vector<16x128xf32>
    tpu.vector_store %arg6[%c0_9, %c0_10], %14 {strides = array<i32>} : memref<16x128xf32, #tpu.memory_space<vmem>>, vector<16x128xf32>,
    return
  }
  func.func @transform_0(%arg0: i32) -> (i32, i32) {
    %c0_i32 = arith.constant 0 : i32
    %c0_i32_0 = arith.constant 0 : i32
    return %arg0, %c0_i32 : i32, i32
  }
  func.func @transform_1(%arg0: i32) -> (i32, i32) {
    %c0_i32 = arith.constant 0 : i32
    %c0_i32_0 = arith.constant 0 : i32
    %c0_i32_1 = arith.constant 0 : i32
    return %c0_i32, %c0_i32_0 : i32, i32
  }
  func.func @transform_2(%arg0: i32) -> (i32, i32) {
    %c0_i32 = arith.constant 0 : i32
    %c0_i32_0 = arith.constant 0 : i32
    %c0_i32_1 = arith.constant 0 : i32
    return %c0_i32, %c0_i32_0 : i32, i32
  }
  func.func @transform_3(%arg0: i32) -> (i32, i32) {
    %c0_i32 = arith.constant 0 : i32
    %c0_i32_0 = arith.constant 0 : i32
    %c0_i32_1 = arith.constant 0 : i32
    return %c0_i32, %c0_i32_0 : i32, i32
  }
  func.func @transform_4(%arg0: i32) -> (i32, i32) {
    %c0_i32 = arith.constant 0 : i32
    %c0_i32_0 = arith.constant 0 : i32
    %c0_i32_1 = arith.constant 0 : i32
    return %c0_i32, %c0_i32_0 : i32, i32
  }
  func.func @transform_5(%arg0: i32) -> (i32, i32) {
    %c0_i32 = arith.constant 0 : i32
    %c0_i32_0 = arith.constant 0 : i32
    return %arg0, %c0_i32 : i32, i32
  }
}

</mosaic_0001>

<bundles_post_ra>
// kernel: tpu_custom_call.1
= control target key start
LH: loop header
LB: loop body
LE: loop exit
PB: predicated region body
PF: predicated region fallthrough
CT: control target
= control target key end

     0   :  { %10 = vsyncpa [#allocation3], 0  ;;  %s379_s0 = inlined_call_operand.hbm [shape: bf16[16,128], index: 0, kind: input, shape index: {}]   ;;  %s380_s1 = inlined_call_operand.hbm [shape: bf16[128,128], index: 1, kind: input, shape index: {}]   ;;  %s381_s2 = inlined_call_operand.vmem [shape: f32[1,128], index: 2, kind: input, shape index: {}]   ;;  %s382_s3 = inlined_call_operand.vmem [shape: f32[1,128], index: 3, kind: input, shape index: {}]   ;;  %s383_s4 = inlined_call_operand.vmem [shape: f32[1,128], index: 4, kind: input, shape index: {}]   ;;  %s384_s5 = inlined_call_operand.hbm [shape: f32[16,128], index: 5, kind: output, shape index: {}]  }
   0x1   :  { %11 = vsyncpa [#allocation6], 0 }
   0x2   :  { %12 = vsyncpa [#allocation4], 0  ;;  %s17_s20 = sshll.u32 %s379_s0, 4  ;;  %s323_s21 = smov [#allocation2]   ;;  %s18_s20 = int_to_ptr.hbm [resolvable:$true] %s17_s20 }
   0x3   :  { %s19_s22 = sshll.u32 %s323_s21, 4  ;;  %s30_s25 = sshll.u32 %s380_s1, 4  ;;  %s20_s22 = int_to_ptr.vmem [resolvable:$true] %s19_s22  ;;  %s31_s25 = int_to_ptr.hbm [resolvable:$true] %s30_s25 }
   0x4   :  { %s324_s26 = smov 64   ;;  %s325_s27 = smov 4  }
   0x5   :  { %25 = dma.hbm_to_vmem [thread:$0]  %s18_s20, 128, %s20_s22, [#allocation3], %s324_s26, %s324_s26, %s325_s27  }
   0x6   :  { %s326_s28 = smov [#allocation5]  }
   0x7   :  { %s32_s29 = sshll.u32 %s326_s28, 4  ;;  %s33_s29 = int_to_ptr.vmem [resolvable:$true] %s32_s29 }
   0x8   :  { %38 = dma.hbm_to_vmem [thread:$0]  %s31_s25, 1024, %s33_s29, [#allocation6], %s324_s26, %s324_s26, %s325_s27  }
   0x9   :  { %317 = dma.done.wait [#allocation3], 128  }
   0xa   :  { %318 = vsyncadd [#allocation3], 4294967168 }
   0xb   :  { %319 = dma.done.wait [#allocation6], 1024  }
   0xc   :  { %320 = vsyncadd [#allocation6], 4294966272  ;;  %v229_v0 = vld [vmem:[#allocation5 + $0x38] sm:$0xff]  ;;  %v228_v1 = vld [vmem:[#allocation5 + $0x30] sm:$0xff]  ;;  %s327_s9 = smov 96   ;;  %s329_s12 = smov 128  }
   0xd   :  { %129 = vmatpush.bf16.msra.mxu0 %v229_v0  ;;  %v227_v2 = vld [vmem:[#allocation5 + $0x28] sm:$0xff]  ;;  %v226_v3 = vld [vmem:[#allocation5 + $0x20] sm:$0xff]  ;;  %v225_v4 = vld [vmem:[#allocation5 + $0x18] sm:$0xff]  ;;  %s330_s13 = smov 8  }
   0xe   :  { %v224_v5 = vld [vmem:[#allocation5 + $0x10] sm:$0xff]  ;;  %v223_v6 = vld [vmem:[#allocation5 + $0x8] sm:$0xff]  ;;  %v222_v7 = vld [vmem:[#allocation5] sm:$0xff] }
   0xf   :  { %v221_v8 = vld [vmem:[#allocation2] sm:$0xff] }
  0x10   :  { %v238_v9 = vld [vmem:[%s381_s2] ss:$0 sm:$0xff]  ;;  %s328_s2 = smov [#allocation7]  }
  0x11   :  { %130 = vmatpush.bf16.msra.mxu0 %v228_v1  ;;  %v239_v12 = vld [vmem:[%s382_s3] ss:$0 sm:$0xff]  ;;  %s169_s3 = sshll.u32 %s328_s2, 4  ;;  %s170_s3 = int_to_ptr.vmem [resolvable:$true] %s169_s3 }
  0x12   :  { %v240_v14 = vld [vmem:[%s383_s4] ss:$0 sm:$0xff]  ;;  %s171_s4 = sshll.u32 %s384_s5, 4  ;;  %s172_s4 = int_to_ptr.hbm [resolvable:$true] %s171_s4 }
  0x15   :  { %131 = vmatpush.bf16.msra.mxu0 %v227_v2 }
  0x19   :  { %132 = vmatpush.bf16.msra.mxu0 %v226_v3 }
  0x1d   :  { %133 = vmatpush.bf16.msra.mxu0 %v225_v4 }
  0x21   :  { %134 = vmatpush.bf16.msra.mxu0 %v224_v5 }
  0x25   :  { %135 = vmatpush.bf16.msra.mxu0 %v223_v6 }
  0x29   :  { %136 = vmatpush.bf16.msra.mxu0 %v222_v7 }
  0x2c   :  { %137 = vmatmul.bf16.vlgmr.msra.gmra.mxu0 %v221_v8 }
  0xa9   :  { %v138_v10 = vpop.f32.mrf.mxu0 }
  0xaa   :  { %v139_v11 = vadd.f32 %v238_v9, %v138_v10 }
  0xac   :  { %241 = vtanh.f32 %v139_v11 }
  0xb1   :  { %v140_v13 = vpop.f32.mrf.mxu0 }
  0xb2   :  { %v242_v15 = vpop.eup %241  ;;  %v141_v16 = vadd.f32 %v238_v9, %v140_v13 }
  0xb3   :  { %v149_v17 = vmul.f32 %v242_v15, %v239_v12 }
  0xb4   :  { %243 = vtanh.f32 %v141_v16 }
  0xb5   :  { %v155_v18 = vadd.f32 %v240_v14, %v149_v17 }
  0xb7   :  { %157 = vrot.lane.b32.xlu0 %v155_v18, %s327_s9 }
  0xba   :  { %v244_v19 = vpop.eup %243 }
  0xbb   :  { %v150_v20 = vmul.f32 %v244_v19, %v239_v12 }
  0xbd   :  { %v156_v21 = vadd.f32 %v240_v14, %v150_v20 }
  0xbf   :  { %159 = vrot.lane.b32.xlu0 %v156_v21, %s327_s9 }
 0x129   :  { %v158_v22 = vpop.permute.xlu0 %157 }
 0x12a   :  { %v161_v23 = vmul.f32 %v158_v22, %v155_v18 }
 0x12c   :  { %163 = vst [vmem:[#allocation7] sm:$0xff] %v161_v23 }
 0x131   :  { %v160_v24 = vpop.permute.xlu0 %159 }
 0x132   :  { %v162_v25 = vmul.f32 %v160_v24, %v156_v21 }
 0x134   :  { %164 = vst [vmem:[#allocation7 + $0x8] sm:$0xff] %v162_v25 }
 0x135   :  { %177 = dma.vmem_to_hbm [thread:$0]  %s170_s3, 256, %s172_s4, [#allocation4], %s329_s12, %s329_s12, %s330_s13  }
 0x136   :  { %321 = dma.done.wait [#allocation4], 256  }
 0x137   :  { %322 = vsyncadd [#allocation4], 4294967040 }
 0x138   :  { %182 = vsyncpa [#allocation3], 1 }
 0x139   :  { %183 = vsyncpa [#allocation6], 1 }
 0x13a   :  { %184 = vsyncpa [#allocation4], 1 }

</bundles_post_ra>
